<compile_context>
chip_gen: v5e
topology: v5e:2x2
jax: 0.10.0
libtpu: 0.0.40
codegen_flags: <defaults>
</compile_context>

<pallas_src>
import math
from functools import partial

import jax
import jax.numpy as jnp
from jax.experimental import pallas as pl
from jax.experimental.pallas import tpu as pltpu


def make_positional_encoding(d_model: int, max_seq_length: int,
                             dtype=jnp.float32) -> jnp.ndarray:
    """Deterministic pe buffer, identical math to the PyTorch __init__.

    Build it once in the model dtype (e.g. bf16) so the forward pass never has to
    re-cast / rewrite the table per call.
    """
    assert d_model % 2 == 0, "d_model must be even (same assumption as the torch recipe)"
    position = jnp.arange(0, max_seq_length, dtype=jnp.float32)[:, None]        # (S, 1)
    div_term = jnp.exp(
        jnp.arange(0, d_model, 2, dtype=jnp.float32) * -(math.log(10000.0) / d_model)
    )                                                                            # (D/2,)
    pe = jnp.zeros((max_seq_length, d_model), dtype=jnp.float32)
    pe = pe.at[:, 0::2].set(jnp.sin(position * div_term))
    pe = pe.at[:, 1::2].set(jnp.cos(position * div_term))
    return pe.astype(dtype)                                                      # (max_S, D)


# --------------------------------------------------------------------------------------
# Kernels
# --------------------------------------------------------------------------------------

def _add_pe_single_block_kernel(x_ref, pe_ref, o_ref):
    # Fast path: whole problem in a single block.  x/o: (B, R, C); pe: (R, C) broadcast.
    o_ref[...] = x_ref[...] + pe_ref[...]


def _add_pe_tiled_kernel(x_ref, pe_ref, o_ref):
    # Row-tiled pe: x/o/pe are matching (tr, C) tiles (batch dim squeezed away).
    o_ref[...] = x_ref[...] + pe_ref[...]


def _add_pe_resident_kernel(x_ref, pe_ref, o_ref, *, tr):
    # Resident pe: pe_ref holds ALL row tiles in VMEM; pick this grid step's tile.
    start = pl.multiple_of(pl.program_id(0) * tr, tr)
    o_ref[...] = x_ref[...] + pe_ref[pl.ds(start, tr), :]


# --------------------------------------------------------------------------------------
# Wrapper
# --------------------------------------------------------------------------------------

def _default_block_bytes() -> int:
    # 4 MiB row tiles are fine on v6e/v7x with an explicit vmem limit; keep 2 MiB on
    # v5e (16 MiB scoped-VMEM default, lowest HBM BW) and anything unrecognized.
    try:
        kind = jax.devices()[0].device_kind.lower()
    except Exception:
        return 2 << 20
    return (4 << 20) if ("v6" in kind or "v7" in kind) else (2 << 20)


def positional_encoding_forward(
    x: jnp.ndarray,
    pe: jnp.ndarray,
    *,
    target_block_bytes=None,
    small_path_bytes: int = 4 << 20,
    pe_resident_bytes: int = 4 << 20,
    donate_x: bool = False,
) -> jnp.ndarray:
    """x: (B, S, D); pe: (max_seq, D). Returns x + pe[:S] broadcast over batch."""
    B, S, D = x.shape
    max_S, D_pe = pe.shape
    assert D_pe == D and max_S >= S
    # Safety net only; prefer make_positional_encoding(..., dtype=x.dtype) at init so
    # no per-call cast / HBM rewrite of the table is emitted.
    if pe.dtype != x.dtype:
        pe = pe.astype(x.dtype)
    itemsize = jnp.dtype(x.dtype).itemsize
    if target_block_bytes is None:
        target_block_bytes = _default_block_bytes()

    # ---- pick a lane-dense 2-D (rows, cols) layout per batch element -----------------
    unfold = None  # how to restore (B, S, D) at the end
    if D % 128 == 0:
        # Natively lane-dense.
        rows, cols = S, D
        x2, pe2 = x, pe
    elif (S * D) % 128 == 0:
        # Narrow d_model (e.g. 32): fold (S, D) into (S*D/128, 128) -> full-lane vst.
        cols = 128
        rows = (S * D) // cols
        x2 = x.reshape(B, rows, cols)
        pe2 = pe[:S].reshape(rows, cols)
        unfold = "reshape"
    else:
        pad_c = (-D) % 128
        if pad_c and pad_c / D <= 0.25:
            # Lane-dense via padding (masked stores cost far more than <=25% extra BW).
            rows, cols = S, D + pad_c
            x2 = jnp.pad(x, ((0, 0), (0, 0), (0, pad_c)))
            pe2 = jnp.pad(pe[:S], ((0, 0), (0, pad_c)))
            unfold = "slice_cols"
        else:
            # Last resort: correct, but with masked partial stores.
            rows, cols = S, D
            x2, pe2 = x, pe[:S]

    io_alias = {0: 0} if donate_x else {}
    cost = pl.CostEstimate(
        flops=B * rows * cols,
        transcendentals=0,
        bytes_accessed=(2 * B * rows * cols + rows * cols) * itemsize,
    )

    total_vmem_bytes = (2 * B + 1) * rows * cols * itemsize
    if total_vmem_bytes <= small_path_bytes:
        # ------------------------- FAST PATH: one block, no grid ----------------------
        pe_fast = pe2 if pe2.shape[0] == rows else pe2[:rows]
        out = pl.pallas_call(
            _add_pe_single_block_kernel,
            out_shape=jax.ShapeDtypeStruct((B, rows, cols), x.dtype),
            cost_estimate=cost,
            input_output_aliases=io_alias,
        )(x2, pe_fast)
    else:
        # ------------------------- TILED PATH -----------------------------------------
        # Row tile: biggest multiple of the dtype's sublane-packing granularity under
        # ~target_block_bytes (8 rows for f32, 16 for bf16, 32 for int8/fp8).
        sub = 8 * (4 // itemsize)
        bytes_per_row = cols * itemsize
        tr = max(sub, (target_block_bytes // bytes_per_row) // sub * sub)
        if tr >= rows:
            tr = rows                          # full-extent block is always legal
        n_row_tiles = pl.cdiv(rows, tr)

        x_spec = pl.BlockSpec((pl.Squeezed(), tr, cols), lambda r, b: (b, r, 0))
        o_spec = pl.BlockSpec((pl.Squeezed(), tr, cols), lambda r, b: (b, r, 0))

        pe_bytes = rows * cols * itemsize
        blk_bytes = tr * cols * itemsize
        if pe_bytes <= pe_resident_bytes:
            # Whole pe table resident in VMEM: one DMA for the whole kernel, one buffer.
            target_rows = n_row_tiles * tr
            avail = pe2.shape[0]
            if avail >= target_rows:
                pe_arr = pe2 if avail == target_rows else pe2[:target_rows]
            else:
                pe_arr = jnp.pad(pe2, ((0, target_rows - avail), (0, 0)))
            pe_spec = pl.BlockSpec((target_rows, cols), lambda r, b: (0, 0))
            kernel = partial(_add_pe_resident_kernel, tr=tr)
            pe_vmem = target_rows * cols * itemsize
        else:
            # Large pe: row-tiled.  Batch is the innermost grid axis, so its block index
            # changes only once every B steps -> single-buffer it when B > 1.
            pe_arr = pe2
            if B > 1:
                pe_spec = pl.BlockSpec((tr, cols), lambda r, b: (r, 0),
                                       pipeline_mode=pl.Buffered(1))
                pe_vmem = blk_bytes
            else:
                pe_spec = pl.BlockSpec((tr, cols), lambda r, b: (r, 0))
                pe_vmem = 2 * blk_bytes
            kernel = _add_pe_tiled_kernel

        # x + out double-buffered, plus pe footprint, plus headroom.
        vmem_need = 2 * 2 * blk_bytes + pe_vmem
        vmem_limit = int(min(max(2 * vmem_need + (2 << 20), 16 << 20), 32 << 20))

        # Row-tile axis is the megacore-sharded axis on v7x (keeps the "pe block index
        # constant across the inner batch axis" reuse per core).  With only one row
        # tile, let the batch axis be parallel instead.
        dims = ("parallel", "parallel") if n_row_tiles == 1 else ("parallel", "arbitrary")

        out = pl.pallas_call(
            kernel,
            out_shape=jax.ShapeDtypeStruct((B, rows, cols), x.dtype),
            grid_spec=pltpu.PrefetchScalarGridSpec(
                num_scalar_prefetch=0,
                # Batch INNERMOST so the pe block index is constant across steps.
                grid=(n_row_tiles, B),
                in_specs=[x_spec, pe_spec],
                out_specs=o_spec,
            ),
            compiler_params=pltpu.CompilerParams(
                dimension_semantics=dims,
                vmem_limit_bytes=vmem_limit,
            ),
            cost_estimate=cost,
            input_output_aliases=io_alias,
        )(x2, pe_arr)

    if unfold == "reshape":
        return out.reshape(B, S, D)
    if unfold == "slice_cols":
        return out[:, :, :D]
    return out


if __name__ == "__main__":
    # Config 1: toy transformer shapes (narrow d_model -> folded lane-dense, fast path).
    d_model, max_seq_length, batch, seq_len = 32, 16, 2, 8
    key = jax.random.PRNGKey(0)
    x = jax.random.normal(key, (batch, seq_len, d_model), dtype=jnp.float32)
    pe = make_positional_encoding(d_model, max_seq_length)
    out = jax.block_until_ready(positional_encoding_forward(x, pe))
    ref = x + pe[None, :seq_len, :]
    assert out.shape == x.shape
    assert jnp.allclose(out, ref, atol=1e-6, rtol=1e-6), "mismatch (D=32 folded, fast path)"

    # Config 2: natively lane-dense d_model=128, fast path.
    d2, s2, b2 = 128, 8, 2
    x2 = jax.random.normal(jax.random.PRNGKey(1), (b2, s2, d2), dtype=jnp.float32)
    pe2 = make_positional_encoding(d2, 16)
    out2 = jax.block_until_ready(positional_encoding_forward(x2, pe2))
    ref2 = x2 + pe2[None, :s2, :]
    assert jnp.allclose(out2, ref2, atol=1e-6, rtol=1e-6), "mismatch (D=128, fast path)"

    # Config 3: force the tiled path (small tiles, fast path disabled) with a ragged
    # last row tile (44 rows, 8-row tiles) and a VMEM-resident pe table.
    d3, s3, b3, max3 = 128, 44, 2, 64
    x3 = jax.random.normal(jax.random.PRNGKey(2), (b3, s3, d3), dtype=jnp.float32)
    pe3 = make_positional_encoding(d3, max3)
    out3 = jax.block_until_ready(positional_encoding_forward(
        x3, pe3, target_block_bytes=8 * d3 * 4, small_path_bytes=0))
    ref3 = x3 + pe3[None, :s3, :]
    assert out3.shape == x3.shape
    assert jnp.allclose(out3, ref3, atol=1e-6, rtol=1e-6), "mismatch (tiled + ragged edge)"

    print("KERNEL_OK")
</pallas_src>

<mosaic_0001>
module attributes {stable_mosaic.version = 11 : i64} {
  func.func @_add_pe_single_block_kernel(%arg0: memref<2x2x128xf32, #tpu.memory_space<vmem>>, %arg1: memref<2x128xf32, #tpu.memory_space<vmem>>, %arg2: memref<2x2x128xf32, #tpu.memory_space<vmem>>) attributes {dimension_semantics = [], scalar_prefetch = 0 : i64, scratch_operands = 0 : i64, tpu.core_type = #tpu.core_type<tc>} {
    %c0 = arith.constant 0 : index
    %c0_0 = arith.constant 0 : index
    %c0_1 = arith.constant 0 : index
    %0 = vector.load %arg0[%c0, %c0_0, %c0_1] : memref<2x2x128xf32, #tpu.memory_space<vmem>>, vector<2x2x128xf32>
    %c0_2 = arith.constant 0 : index
    %c0_3 = arith.constant 0 : index
    %1 = vector.load %arg1[%c0_2, %c0_3] : memref<2x128xf32, #tpu.memory_space<vmem>>, vector<2x128xf32>
    %2 = vector.shape_cast %1 : vector<2x128xf32> to vector<1x2x128xf32>
    %3 = vector.broadcast %2 : vector<1x2x128xf32> to vector<2x2x128xf32>
    %4 = arith.addf %0, %3 : vector<2x2x128xf32>
    %c0_4 = arith.constant 0 : index
    %c0_5 = arith.constant 0 : index
    %c0_6 = arith.constant 0 : index
    %5 = vector.load %arg2[%c0_4, %c0_5, %c0_6] : memref<2x2x128xf32, #tpu.memory_space<vmem>>, vector<2x2x128xf32>
    tpu.vector_store %arg2[%c0_4, %c0_5, %c0_6], %4 {strides = array<i32>} : memref<2x2x128xf32, #tpu.memory_space<vmem>>, vector<2x2x128xf32>,
    return
  }
}

</mosaic_0001>

<bundles_post_ra>
// kernel: tpu_custom_call.1
= control target key start
LH: loop header
LB: loop body
LE: loop exit
PB: predicated region body
PF: predicated region fallthrough
CT: control target
= control target key end

     0   :  { %7 = vsyncpa [#allocation3], 0  ;;  %s181_s0 = inlined_call_operand.hbm [shape: f32[2,2,128], index: 0, kind: input, shape index: {}]   ;;  %s182_s1 = inlined_call_operand.hbm [shape: f32[2,128], index: 1, kind: input, shape index: {}]   ;;  %s183_s2 = inlined_call_operand.hbm [shape: f32[2,2,128], index: 2, kind: output, shape index: {}]  }
   0x1   :  { %8 = vsyncpa [#allocation6], 0 }
   0x2   :  { %9 = vsyncpa [#allocation4], 0  ;;  %s14_s11 = sshll.u32 %s181_s0, 4  ;;  %s152_s12 = smov [#allocation2]   ;;  %s15_s11 = int_to_ptr.hbm [resolvable:$true] %s14_s11 }
   0x3   :  { %s16_s13 = sshll.u32 %s152_s12, 4  ;;  %s28_s16 = sshll.u32 %s182_s1, 4  ;;  %s17_s13 = int_to_ptr.vmem [resolvable:$true] %s16_s13  ;;  %s29_s16 = int_to_ptr.hbm [resolvable:$true] %s28_s16 }
   0x4   :  { %s153_s17 = smov 32   ;;  %s154_s18 = smov 2  }
   0x5   :  { %22 = dma.hbm_to_vmem [thread:$0]  %s15_s11, 64, %s17_s13, [#allocation3], %s153_s17, %s153_s17, %s154_s18  }
   0x6   :  { %s155_s19 = smov [#allocation5]  }
   0x7   :  { %s30_s20 = sshll.u32 %s155_s19, 4  ;;  %s31_s20 = int_to_ptr.vmem [resolvable:$true] %s30_s20 }
   0x8   :  { %33 = dma.hbm_to_vmem [thread:$0]  %s29_s16, 32, %s31_s20, [#allocation6]  }
   0x9   :  { %146 = dma.done.wait [#allocation3], 64  }
   0xa   :  { %147 = vsyncadd [#allocation3], 4294967232 }
   0xb   :  { %148 = dma.done.wait [#allocation6], 32  }
   0xc   :  { %149 = vsyncadd [#allocation6], 4294967264  ;;  %s156_s0 = smov [#allocation7]   ;;  %s55_s24 = sshll.u32 %s183_s2, 4  ;;  %v42_v0 = vld [vmem:[#allocation2] sm:$0x3]  ;;  %s56_s24 = int_to_ptr.hbm [resolvable:$true] %s55_s24 }
   0xd   :  { %s53_s21 = sshll.u32 %s156_s0, 4  ;;  %v44_v1 = vld [vmem:[#allocation5] sm:$0x3]  ;;  %v43_v2 = vld [vmem:[#allocation2 + $0x2] sm:$0x3]  ;;  %s54_s21 = int_to_ptr.vmem [resolvable:$true] %s53_s21 }
   0xe   :  { %v45_v3 = vadd.f32 %v44_v1, %v42_v0  ;;  %v46_v4 = vadd.f32 %v44_v1, %v43_v2 }
  0x10   :  { %47 = vst [vmem:[#allocation7] sm:$0x3] %v45_v3 }
  0x11   :  { %48 = vst [vmem:[#allocation7 + $0x2] sm:$0x3] %v46_v4 }
  0x12   :  { %61 = dma.vmem_to_hbm [thread:$0]  %s54_s21, 64, %s56_s24, [#allocation4], %s153_s17, %s153_s17, %s154_s18  }
  0x13   :  { %150 = dma.done.wait [#allocation4], 64  }
  0x14   :  { %151 = vsyncadd [#allocation4], 4294967232 }
  0x15   :  { %66 = vsyncpa [#allocation3], 1 }
  0x16   :  { %67 = vsyncpa [#allocation6], 1 }
  0x17   :  { %68 = vsyncpa [#allocation4], 1 }

</bundles_post_ra>
